<compile_context>
chip_gen: v5e
topology: v5e:2x2
jax: 0.10.0
libtpu: 0.0.40
codegen_flags: <defaults>
</compile_context>

<pallas_src>
import functools

import jax
import jax.numpy as jnp
from jax import lax
from jax.experimental import pallas as pl
from jax.experimental.pallas import tpu as pltpu

_LANES = 128
_PER_BUFFER_BUDGET = 8 * 1024 * 1024      # bytes per (double-buffered) input tile
_VMEM_LIMIT_BYTES = 48 * 1024 * 1024      # <= 64 MiB physical on v7x, << 128 MiB on v5e/v6e


def _channel_attention_kernel(x_ref, w1t_ref, w2t_ref, o_ref, sum_sc, max_sc,
                              *, hw_total, hw_tile):
    # x_ref: (1, C, T) block of the NCHW activations for one batch element.
    # w1t_ref: (C, Cr) = W1^T;  w2t_ref: (Cr, C) = W2^T.
    # sum_sc / max_sc: (C, 128) f32 lane-dense accumulators.
    k = pl.program_id(1)
    n_k = pl.num_programs(1)

    @pl.when(k == 0)
    def _init():
        sum_sc[...] = jnp.zeros_like(sum_sc)
        max_sc[...] = jnp.full_like(max_sc, -jnp.inf)

    full_chunks = hw_tile // _LANES          # static: full 128-lane chunks per tile
    tail_static = hw_tile % _LANES           # static: nonzero only for a single full-extent tile
    ragged_grid = (hw_total % hw_tile) != 0  # static: last tile of a multi-tile grid is partial

    def accum(j, carry):
        s, m = carry
        off = pl.multiple_of(j * _LANES, _LANES)
        chunk = x_ref[0, :, pl.ds(off, _LANES)].astype(jnp.float32)   # (C, 128)
        return s + chunk, jnp.maximum(m, chunk)

    if ragged_grid:
        # hw_tile is a multiple of 128 here (enforced by the wrapper), so the
        # 128-wide chunk reads below stay inside the VMEM block.
        remaining = hw_total - k * hw_tile
        valid = jnp.minimum(remaining, hw_tile)
        n_full = valid // _LANES
    else:
        valid = hw_tile
        n_full = full_chunks

    s, m = lax.fori_loop(0, n_full, accum, (sum_sc[...], max_sc[...]))
    sum_sc[...] = s
    max_sc[...] = m

    if ragged_grid and (hw_total % _LANES) != 0:
        # Dynamic tail: fires at most once (last tile), O(1) chunk of masked work.
        tail = valid - n_full * _LANES

        @pl.when(tail > 0)
        def _tail():
            off = pl.multiple_of(n_full * _LANES, _LANES)
            chunk = x_ref[0, :, pl.ds(off, _LANES)].astype(jnp.float32)
            keep = lax.broadcasted_iota(jnp.int32, (1, _LANES), 1) < tail
            sum_sc[...] += jnp.where(keep, chunk, 0.0)
            max_sc[...] = jnp.maximum(max_sc[...],
                                      jnp.where(keep, chunk, -jnp.inf))

    if tail_static:
        # Single full-extent tile whose length is not a multiple of 128:
        # everything is static and in-bounds, no mask needed.
        off = full_chunks * _LANES
        chunk = x_ref[0, :, off:off + tail_static].astype(jnp.float32)  # (C, tail)
        sum_sc[:, :tail_static] += chunk
        max_sc[:, :tail_static] = jnp.maximum(max_sc[:, :tail_static], chunk)

    @pl.when(k == n_k - 1)
    def _finalize():
        inv_hw = jnp.float32(1.0 / hw_total)
        s_col = jnp.sum(sum_sc[...], axis=-1, keepdims=True)      # (C, 1)
        m_col = jnp.max(max_sc[...], axis=-1, keepdims=True)      # (C, 1)
        avg_row = jnp.transpose(s_col) * inv_hw                   # (1, C) lane-dense
        max_row = jnp.transpose(m_col)                            # (1, C)
        stats = jnp.concatenate([avg_row, max_row], axis=0)       # (2, C)

        w1t = w1t_ref[...].astype(jnp.float32)                    # (C, Cr)
        w2t = w2t_ref[...].astype(jnp.float32)                    # (Cr, C)
        # Fused shared-MLP: both pooled vectors go through W1/ReLU/W2 at once.
        h = jnp.maximum(jnp.dot(stats, w1t,
                                preferred_element_type=jnp.float32), 0.0)   # (2, Cr)
        o2 = jnp.dot(h, w2t, preferred_element_type=jnp.float32)            # (2, C)
        gate = jax.nn.sigmoid(o2[0:1, :] + o2[1:2, :])                      # (1, C)
        o_ref[0] = gate.astype(o_ref.dtype)


def _pick_hw_tile(hw, c, itemsize):
    """Largest HW tile whose double-buffered DMA fits the per-buffer budget."""
    max_t = _PER_BUFFER_BUDGET // max(1, c * itemsize)
    if hw <= max_t:
        return hw                               # full extent: single tile, no grid overhead
    t = (max_t // _LANES) * _LANES
    if t < 512:
        # Very large C: pick the widest 128-multiple that keeps two buffers
        # safely under the raised VMEM limit (keeps DMA rows as long as possible).
        hard_max = (_VMEM_LIMIT_BYTES // 2 - (1 << 20)) // max(1, c * itemsize)
        t = max(_LANES, min(512, (hard_max // _LANES) * _LANES))
    return t


def channel_attention(x_nchw, w1, w2, *, hw_tile=None):
    """x_nchw: (B, C, H, W); w1: (C//r, C); w2: (C, C//r). Returns (B, C, 1, 1)."""
    B, C, H, W = x_nchw.shape
    HW = H * W
    Cr = w1.shape[0]
    assert w1.shape == (Cr, C) and w2.shape == (C, Cr)

    # Free reshape (collapses contiguous trailing dims) — NO transpose.
    x = x_nchw.reshape(B, C, HW)
    itemsize = jnp.dtype(x_nchw.dtype).itemsize

    if hw_tile is None:
        T = _pick_hw_tile(HW, C, itemsize)
    else:
        T = min(int(hw_tile), HW)
        if T < HW:                              # multi-tile: keep lane dim 128-aligned
            T = max(_LANES, (T // _LANES) * _LANES)
    num_k = pl.cdiv(HW, T)

    # Tiny one-time weight transposes outside the kernel (native MXU orientation inside).
    w1t = w1.T                                  # (C, Cr)
    w2t = w2.T                                  # (Cr, C)

    kernel = functools.partial(_channel_attention_kernel, hw_total=HW, hw_tile=T)

    w_itemsize = jnp.dtype(w1.dtype).itemsize
    cost = pl.CostEstimate(
        flops=int(2 * B * C * HW + 8 * B * C * Cr),
        transcendentals=int(B * C),
        bytes_accessed=int(B * C * HW * itemsize
                           + 2 * C * Cr * w_itemsize
                           + B * C * itemsize),
    )

    out = pl.pallas_call(
        kernel,
        out_shape=jax.ShapeDtypeStruct((B, 1, C), x_nchw.dtype),
        grid_spec=pltpu.PrefetchScalarGridSpec(
            num_scalar_prefetch=0,
            grid=(B, num_k),
            in_specs=[
                # Activations: tiled over spatial positions (reduction axis).
                pl.BlockSpec((1, C, T), lambda b, k: (b, 0, k)),
                # Tiny MLP weights: constant block, fetched once.
                pl.BlockSpec((C, Cr), lambda b, k: (0, 0)),
                pl.BlockSpec((Cr, C), lambda b, k: (0, 0)),
            ],
            # Output block is revisited across k (accumulator pattern); written
            # only in the finalize step; lane-dense (C along lanes).
            out_specs=pl.BlockSpec((1, 1, C), lambda b, k: (b, 0, 0)),
            scratch_shapes=[
                pltpu.VMEM((C, _LANES), jnp.float32),   # per-channel f32 partial sums
                pltpu.VMEM((C, _LANES), jnp.float32),   # per-channel running max
            ],
        ),
        compiler_params=pltpu.CompilerParams(
            dimension_semantics=("parallel", "arbitrary"),
            vmem_limit_bytes=_VMEM_LIMIT_BYTES),
        cost_estimate=cost,
    )(x, w1t, w2t)

    return out.reshape(B, C, 1, 1)


def _reference(x_nchw, w1, w2):
    """Pure-JAX reference matching the PyTorch module semantics."""
    avg = jnp.mean(x_nchw, axis=(2, 3))                  # (B, C)
    mx = jnp.max(x_nchw, axis=(2, 3))                    # (B, C)

    def mlp(v):  # v: (B, C)
        h = jnp.maximum(v @ w1.T, 0.0)                   # (B, Cr)
        return h @ w2.T                                  # (B, C)

    return jax.nn.sigmoid(mlp(avg) + mlp(mx)).reshape(*avg.shape, 1, 1)


if __name__ == "__main__":
    key = jax.random.PRNGKey(0)
    kx, k1, k2, kx2 = jax.random.split(key, 4)

    # Case 1: shapes consistent with the module (ratio=16 -> C % 16 == 0),
    # HW a multiple of 128 -> single tile, no masking at all.
    B, C, H, W = 2, 64, 16, 16
    ratio = 16
    Cr = C // ratio

    x = jax.random.normal(kx, (B, C, H, W), dtype=jnp.float32)
    w1 = jax.random.normal(k1, (Cr, C), dtype=jnp.float32) * (2.0 / C) ** 0.5
    w2 = jax.random.normal(k2, (C, Cr), dtype=jnp.float32) * (2.0 / Cr) ** 0.5

    out = jax.block_until_ready(channel_attention(x, w1, w2))
    ref = _reference(x, w1, w2)
    assert out.shape == (B, C, 1, 1)
    assert jnp.allclose(out, ref, atol=1e-5, rtol=1e-5), "mismatch vs reference"

    # Case 2: non-128-multiple spatial extent with default (single-tile)
    # tiling -> exercises the static in-bounds tail path.
    H2, W2 = 18, 18
    x2 = jax.random.normal(kx2, (B, C, H2, W2), dtype=jnp.float32)
    out2 = jax.block_until_ready(channel_attention(x2, w1, w2))
    ref2 = _reference(x2, w1, w2)
    assert jnp.allclose(out2, ref2, atol=1e-5, rtol=1e-5), "mismatch (static tail)"

    # Case 3: forced small HW tile -> multi-step reduction with a ragged last
    # tile, exercising the dynamic chunk loop + masked-tail path.
    out3 = jax.block_until_ready(channel_attention(x2, w1, w2, hw_tile=128))
    assert jnp.allclose(out3, ref2, atol=1e-5, rtol=1e-5), "mismatch (tiled/masked)"

    print("KERNEL_OK")
</pallas_src>

<mosaic_0001>
module attributes {stable_mosaic.version = 11 : i64} {
  func.func @_channel_attention_kernel(%arg0: i32, %arg1: i32, %arg2: memref<1x64x256xf32, #tpu.memory_space<vmem>>, %arg3: memref<64x4xf32, #tpu.memory_space<vmem>>, %arg4: memref<4x64xf32, #tpu.memory_space<vmem>>, %arg5: memref<1x1x64xf32, #tpu.memory_space<vmem>>, %arg6: memref<64x128xf32, #tpu.memory_space<vmem>>, %arg7: memref<64x128xf32, #tpu.memory_space<vmem>>) attributes {dimension_semantics = [#tpu.dimension_semantics<parallel>, #tpu.dimension_semantics<arbitrary>], iteration_bounds = array<i64: 2, 1>, scalar_prefetch = 0 : i64, scratch_operands = 2 : i64, tpu.core_type = #tpu.core_type<tc>, window_params = [{transform_indices = @transform_0, window_bounds = array<i64: 1, 64, 256>}, {pipeline_mode = #tpu.pipeline_mode<synchronous>, transform_indices = @transform_1, window_bounds = array<i64: 64, 4>}, {pipeline_mode = #tpu.pipeline_mode<synchronous>, transform_indices = @transform_2, window_bounds = array<i64: 4, 64>}, {transform_indices = @transform_3, window_bounds = array<i64: 1, 1, 64>}]} {
    %c0_i32 = arith.constant 0 : i32
    %0 = arith.cmpi eq, %arg1, %c0_i32 : i32
    %1 = arith.extui %0 : i1 to i32
    %c0_i32_0 = arith.constant 0 : i32
    %2 = arith.cmpi ne, %1, %c0_i32_0 : i32
    scf.if %2 {
      %cst = arith.constant 0.000000e+00 : f32
      %12 = vector.broadcast %cst : f32 to vector<64x128xf32>
      %c0_12 = arith.constant 0 : index
      %c0_13 = arith.constant 0 : index
      %13 = vector.load %arg6[%c0_12, %c0_13] : memref<64x128xf32, #tpu.memory_space<vmem>>, vector<64x128xf32>
      tpu.vector_store %arg6[%c0_12, %c0_13], %12 {strides = array<i32>} : memref<64x128xf32, #tpu.memory_space<vmem>>, vector<64x128xf32>,
      %cst_14 = arith.constant 0xFF800000 : f32
      %14 = vector.broadcast %cst_14 : f32 to vector<64x128xf32>
      %c0_15 = arith.constant 0 : index
      %c0_16 = arith.constant 0 : index
      %15 = vector.load %arg7[%c0_15, %c0_16] : memref<64x128xf32, #tpu.memory_space<vmem>>, vector<64x128xf32>
      tpu.vector_store %arg7[%c0_15, %c0_16], %14 {strides = array<i32>} : memref<64x128xf32, #tpu.memory_space<vmem>>, vector<64x128xf32>,
    } else {
    }
    %c0 = arith.constant 0 : index
    %c0_1 = arith.constant 0 : index
    %3 = vector.load %arg6[%c0, %c0_1] : memref<64x128xf32, #tpu.memory_space<vmem>>, vector<64x128xf32>
    %c0_2 = arith.constant 0 : index
    %c0_3 = arith.constant 0 : index
    %4 = vector.load %arg7[%c0_2, %c0_3] : memref<64x128xf32, #tpu.memory_space<vmem>>, vector<64x128xf32>
    %c0_i32_4 = arith.constant 0 : i32
    %c2_i32 = arith.constant 2 : i32
    %5 = arith.addi %c0_i32_4, %c2_i32 : i32
    %c1_i32 = arith.constant 1 : i32
    %6:2 = scf.for %arg8 = %c0_i32_4 to %5 step %c1_i32 iter_args(%arg9 = %3, %arg10 = %4) -> (vector<64x128xf32>, vector<64x128xf32>)  : i32 {
      %c128_i32 = arith.constant 128 : i32
      %12 = arith.muli %arg8, %c128_i32 : i32
      %13 = tpu.assume_multiple %12, 128 : i32
      %c0_12 = arith.constant 0 : index
      %c0_13 = arith.constant 0 : index
      %14 = arith.index_cast %13 : i32 to index
      %15 = vector.load %arg2[%c0_12, %c0_13, %14] : memref<1x64x256xf32, #tpu.memory_space<vmem>>, vector<1x64x128xf32>
      %16 = vector.shape_cast %15 : vector<1x64x128xf32> to vector<64x128xf32>
      %17 = arith.addf %arg9, %16 : vector<64x128xf32>
      %18 = arith.maximumf %arg10, %16 : vector<64x128xf32>
      scf.yield %17, %18 : vector<64x128xf32>, vector<64x128xf32>
    }
    %c2_i32_5 = arith.constant 2 : i32
    %c0_6 = arith.constant 0 : index
    %c0_7 = arith.constant 0 : index
    %7 = vector.load %arg6[%c0_6, %c0_7] : memref<64x128xf32, #tpu.memory_space<vmem>>, vector<64x128xf32>
    tpu.vector_store %arg6[%c0_6, %c0_7], %6#0 {strides = array<i32>} : memref<64x128xf32, #tpu.memory_space<vmem>>, vector<64x128xf32>,
    %c0_8 = arith.constant 0 : index
    %c0_9 = arith.constant 0 : index
    %8 = vector.load %arg7[%c0_8, %c0_9] : memref<64x128xf32, #tpu.memory_space<vmem>>, vector<64x128xf32>
    tpu.vector_store %arg7[%c0_8, %c0_9], %6#1 {strides = array<i32>} : memref<64x128xf32, #tpu.memory_space<vmem>>, vector<64x128xf32>,
    %c0_i32_10 = arith.constant 0 : i32
    %9 = arith.cmpi eq, %arg1, %c0_i32_10 : i32
    %10 = arith.extui %9 : i1 to i32
    %c0_i32_11 = arith.constant 0 : i32
    %11 = arith.cmpi ne, %10, %c0_i32_11 : i32
    scf.if %11 {
      %c0_12 = arith.constant 0 : index
      %c0_13 = arith.constant 0 : index
      %12 = vector.load %arg6[%c0_12, %c0_13] : memref<64x128xf32, #tpu.memory_space<vmem>>, vector<64x128xf32>
      %cst = arith.constant dense<0.000000e+00> : vector<64xf32>
      %13 = vector.multi_reduction <add>, %12, %cst [1] : vector<64x128xf32> to vector<64xf32>
      %14 = vector.shape_cast %13 : vector<64xf32> to vector<64x1xf32>
      %c0_14 = arith.constant 0 : index
      %c0_15 = arith.constant 0 : index
      %15 = vector.load %arg7[%c0_14, %c0_15] : memref<64x128xf32, #tpu.memory_space<vmem>>, vector<64x128xf32>
      %cst_16 = arith.constant dense<0xFF800000> : vector<64xf32>
      %16 = vector.multi_reduction <maximumf>, %15, %cst_16 [1] : vector<64x128xf32> to vector<64xf32>
      %17 = vector.shape_cast %16 : vector<64xf32> to vector<64x1xf32>
      %18 = tpu.transpose %14, [1, 0] : vector<64x1xf32> -> vector<1x64xf32>
      %cst_17 = arith.constant 3.906250e-03 : f32
      %19 = vector.broadcast %cst_17 : f32 to vector<1x64xf32>
      %20 = arith.mulf %18, %19 : vector<1x64xf32>
      %21 = tpu.transpose %17, [1, 0] : vector<64x1xf32> -> vector<1x64xf32>
      %22 = tpu.concatenate %20, %21 in 0 : vector<1x64xf32>, vector<1x64xf32> -> vector<2x64xf32>
      %c0_18 = arith.constant 0 : index
      %c0_19 = arith.constant 0 : index
      %23 = vector.load %arg3[%c0_18, %c0_19] : memref<64x4xf32, #tpu.memory_space<vmem>>, vector<64x4xf32>
      %c0_20 = arith.constant 0 : index
      %c0_21 = arith.constant 0 : index
      %24 = vector.load %arg4[%c0_20, %c0_21] : memref<4x64xf32, #tpu.memory_space<vmem>>, vector<4x64xf32>
      %cst_22 = arith.constant dense<0.000000e+00> : vector<2x4xf32>
      %25 = tpu.matmul %22, %23, %cst_22 {dimension_numbers = #tpu.dot_dimension_numbers<[1], [0], [0], [1], [0, 0, 1, 1], [], []>} : vector<2x64xf32>, vector<64x4xf32>, vector<2x4xf32> -> vector<2x4xf32>
      %cst_23 = arith.constant 0.000000e+00 : f32
      %26 = vector.broadcast %cst_23 : f32 to vector<2x4xf32>
      %27 = arith.maximumf %25, %26 : vector<2x4xf32>
      %cst_24 = arith.constant dense<0.000000e+00> : vector<2x64xf32>
      %28 = tpu.matmul %27, %24, %cst_24 {dimension_numbers = #tpu.dot_dimension_numbers<[1], [0], [0], [1], [0, 0, 1, 1], [], []>} : vector<2x4xf32>, vector<4x64xf32>, vector<2x64xf32> -> vector<2x64xf32>
      %29 = vector.extract_strided_slice %28 {offsets = [0, 0], sizes = [1, 64], strides = [1, 1]} : vector<2x64xf32> to vector<1x64xf32>
      %30 = vector.extract_strided_slice %28 {offsets = [1, 0], sizes = [1, 64], strides = [1, 1]} : vector<2x64xf32> to vector<1x64xf32>
      %31 = arith.addf %29, %30 : vector<1x64xf32>
      %32 = arith.negf %31 : vector<1x64xf32>
      %33 = math.exp %32 : vector<1x64xf32>
      %cst_25 = arith.constant 1.000000e+00 : f32
      %34 = vector.broadcast %cst_25 : f32 to vector<1x64xf32>
      %35 = arith.addf %34, %33 : vector<1x64xf32>
      %36 = arith.divf %34, %35 : vector<1x64xf32>
      %c0_26 = arith.constant 0 : index
      %c0_27 = arith.constant 0 : index
      %c0_28 = arith.constant 0 : index
      %37 = vector.load %arg5[%c0_26, %c0_27, %c0_28] : memref<1x1x64xf32, #tpu.memory_space<vmem>>, vector<1x1x64xf32>
      %38 = vector.shape_cast %37 : vector<1x1x64xf32> to vector<1x64xf32>
      %39 = vector.shape_cast %36 : vector<1x64xf32> to vector<1x1x64xf32>
      tpu.vector_store %arg5[%c0_26, %c0_27, %c0_28], %39 {strides = array<i32>} : memref<1x1x64xf32, #tpu.memory_space<vmem>>, vector<1x1x64xf32>,
    } else {
    }
    return
  }
  func.func @transform_0(%arg0: i32, %arg1: i32) -> (i32, i32, i32) {
    %c0_i32 = arith.constant 0 : i32
    %c0_i32_0 = arith.constant 0 : i32
    return %arg0, %c0_i32, %arg1 : i32, i32, i32
  }
  func.func @transform_1(%arg0: i32, %arg1: i32) -> (i32, i32) {
    %c0_i32 = arith.constant 0 : i32
    %c0_i32_0 = arith.constant 0 : i32
    %c0_i32_1 = arith.constant 0 : i32
    return %c0_i32, %c0_i32_0 : i32, i32
  }
  func.func @transform_2(%arg0: i32, %arg1: i32) -> (i32, i32) {
    %c0_i32 = arith.constant 0 : i32
    %c0_i32_0 = arith.constant 0 : i32
    %c0_i32_1 = arith.constant 0 : i32
    return %c0_i32, %c0_i32_0 : i32, i32
  }
  func.func @transform_3(%arg0: i32, %arg1: i32) -> (i32, i32, i32) {
    %c0_i32 = arith.constant 0 : i32
    %c0_i32_0 = arith.constant 0 : i32
    %c0_i32_1 = arith.constant 0 : i32
    return %arg0, %c0_i32, %c0_i32_0 : i32, i32, i32
  }
}

</mosaic_0001>

<bundles_post_ra>
// kernel: tpu_custom_call.1
= control target key start
LH: loop header
LB: loop body
LE: loop exit
PB: predicated region body
PF: predicated region fallthrough
CT: control target
= control target key end

     0   :  { %8 = vsyncpa [#allocation5], 0  ;;  %s1409_s0 = inlined_call_operand.hbm [shape: f32[2,64,256], index: 0, kind: input, shape index: {}]   ;;  %s1410_s1 = inlined_call_operand.vmem [shape: f32[64,4], index: 1, kind: input, shape index: {}]   ;;  %s1411_s2 = inlined_call_operand.vmem [shape: f32[4,64], index: 2, kind: input, shape index: {}]   ;;  %s1412_s3 = inlined_call_operand.hbm [shape: f32[2,1,64], index: 3, kind: output, shape index: {}]  }
   0x1   :  { %10 = vsyncpa [#allocation5 + $0x1], 0 }
   0x2   :  { %11 = vsyncpa [#allocation6], 0 }
   0x3   :  { %13 = vsyncpa [#allocation6 + $0x1], 0  ;;  %s1159_s12 = smov 0   ;;  %s1161_s13 = smov 0  }
   0x4   :  { %s1163_s14 = smov 0   ;;  %s1165_s15 = smov 0  }
   0x5   :  { %s1167_s16 = smov 0   ;;  %s1169_s17 = smov 0  }
   0x6 LB: > { %s663_s18 = sadd.s32 4294967295, %s1067_s17   ;;  %s664_s19 = sadd.s32 4294967294, %s1067_s17   ;;  %s1067_s17 = sphi %s1169_s17, %s19_s17   ;;  %s1063_s16 = sphi %s1167_s16, %s1438_s16   ;;  %s1059_s15 = sphi %s1165_s15, %s1437_s15   ;;  %s1055_s14 = sphi %s1163_s14, %s1436_s14   ;;  %s1051_s13 = sphi %s1161_s13, %s1435_s13   ;;  %s1047_s12 = sphi %s1159_s12, %s1434_s12  }
   0x7   : > { %s31_s20 = sadd.s32 1, %s1063_s16  ;;  %s40_s21 = sadd.s32 1, %s1055_s14 }
   0x8   : > { %p33_p0 = scmp.ge.s32.totalorder %s31_s20, 2  ;;  %p47_p1 = scmp.ne.s32.totalorder %s1055_s14, %s1051_s13 }
   0x9   : > { %p48_p2 = scmp.eq.s32.totalorder %s1067_s17, 0  ;;  %p53_p3 = scmp.ne.s32.totalorder %s1051_s13, %s1047_s12 }
   0xa   : > { %s1440_s20 = smov (%p33_p0, %s31_s20), 0  ;;  %p54_p5 = scmp.eq.s32.totalorder %s663_s18, 0 }
   0xb   : > { %p1200_p4 = por %p48_p2, %p47_p1  ;;  %s35_s23 = ssub.s32 %s1063_s16, %s1440_s20 }
   0xc   : > { %p119_p6 = scmp.eq.s32.totalorder %s663_s18, 1  ;;  %p38_p7 = scmp.eq.s32.totalorder %s35_s23, 0 }
   0xd   : > { %p1206_p8 = por %p54_p5, %p53_p3  ;;  %p125_p10 = scmp.eq.s32.totalorder %s664_s19, 1 }
   0xe   : > { %p1210_p9 = por %p119_p6, %p47_p1  ;;  %p666_p12 = scmp.ge.s32.totalorder %s1067_s17, 2 }
   0xf   : > { %s1215_s26 = scalar_select %p38_p7, %s1055_s14, %s40_s21  }
  0x10   : > { %p1217_p11 = por %p125_p10, %p53_p3  ;;  %p693_p13 = scmp.lt.s32.totalorder %s1067_s17, 2 }
  0x11   : > { %s151_s28 = sand.u32 1, %s1055_s14   ;;  %s680_s30 = sshll.u32 %s1063_s16, 7 }
  0x12   : > { %s667_s29 = sshll.u32 %s151_s28, 7  ;;  %s162_s6 = scalar_lea.hbm %s1409_s0, %s680_s30 }
  0x13   : > { %s155_s7 = scalar_lea.vmem [#allocation4], %s667_s29  ;;  %s163_s9 = sshll.u32 %s162_s6, 4  ;;  %s164_s9 = int_to_ptr.hbm [resolvable:$true] %s163_s9 }
  0x14   : > { %s165_s8 = sshll.u32 %s155_s7, 4  ;;  %p686_p0 = pnand %p693_p13, %p1200_p4  ;;  %s166_s8 = int_to_ptr.vmem [resolvable:$true] %s165_s8 }
  0x15   : > { %p670_p1 = scmp.ge.s32.totalorder %s1067_s17, 1  ;;  %s152_s10 = scalar_lea.sflag [#allocation5], %s151_s28 }
  0x16   : > { %s1137_s11 = smov 256   ;;  %s1138_s18 = smov 16  }
  0x17   : > { %688 = dma.hbm_to_vmem [thread:$0]  (!%p686_p0), %s164_s9, 2048, %s166_s8, %s152_s10, %s1137_s11, %s1137_s11, %s1138_s18  }
  0x18   : > { %p173_p2 = scmp.lt.s32.totalorder %s1067_s17, 3 }
  0x1a   : > { %p174_p3 = pnand %p670_p1, %p173_p2 }
  0x1b   : > { %s1233_s19 = sand.u32 (!%p174_p3), 1, %s1051_s13  }
  0x1c   : > { %177 = sbr.rel (%p174_p3) target bundleno = 618 (0x26a), region = 32  ;;  %s671_s21 = sshll.u32 (!%p174_p3), %s1233_s19, 7 }
  0x1d   : > { %s180_s23 = scalar_lea.sflag (!%p174_p3), [#allocation5], %s1233_s19  ;;  %s1237_s29 = scalar_lea.vmem (!%p174_p3), [#allocation4], %s671_s21 }
  0x21   : > { %1038 = dma.done.wait (%p1206_p8), %s180_s23, 2048  }
  0x22   : > { %1040 = vsyncadd (%p1206_p8), %s180_s23, 4294965248  ;;  %s205_s22 = scalar_lea.vmem [#allocation7], %s1233_s19  ;;  %v1244_v0 = vmov -inf   ;;  %v1246_v1 = vmov -inf   ;;  %v1248_v2 = vmov -inf   ;;  %v1250_v3 = vmov -inf  }
  0x23   : > { %v1252_v4 = vmov -inf   ;;  %v1254_v5 = vmov -inf   ;;  %v1256_v6 = vmov -inf   ;;  %v1258_v7 = vmov -inf   ;;  %s1276_s24 = smov 0  }
  0x24   : > { %v1260_v8 = vmov 0.0   ;;  %v1262_v9 = vmov 0.0   ;;  %v1264_v10 = vmov 0.0   ;;  %v1266_v11 = vmov 0.0  }
  0x25   : > { %v1268_v12 = vmov 0.0   ;;  %v1270_v13 = vmov 0.0   ;;  %v1272_v14 = vmov 0.0   ;;  %v1274_v15 = vmov 0.0  }
  0x26 LB: >> { %s672_s28 = sshll.u32 %s1135_s24, 7  ;;  %s248_s24 = sadd.s32 1, %s1135_s24   ;;  %s1135_s24 = sphi %s1276_s24, %s248_s24   ;;  %v1131_v15 = vphi %v1274_v15, %v1433_v15   ;;  %v1127_v14 = vphi %v1272_v14, %v1432_v14   ;;  %v1123_v13 = vphi %v1270_v13, %v1431_v13   ;;  %v1119_v12 = vphi %v1268_v12, %v1430_v12   ;;  %v1115_v11 = vphi %v1266_v11, %v1429_v11   ;;  %v1111_v10 = vphi %v1264_v10, %v1428_v10   ;;  %v1107_v9 = vphi %v1262_v9, %v1427_v9   ;;  %v1103_v8 = vphi %v1260_v8, %v1426_v8   ;;  %v1099_v7 = vphi %v1258_v7, %v1425_v7   ;;  %v1095_v6 = vphi %v1256_v6, %v1424_v6   ;;  %v1091_v5 = vphi %v1254_v5, %v1423_v5   ;;  %v1087_v4 = vphi %v1252_v4, %v1422_v4   ;;  %v1083_v3 = vphi %v1250_v3, %v1421_v3   ;;  %v1079_v2 = vphi %v1248_v2, %v1420_v2   ;;  %v1075_v1 = vphi %v1246_v1, %v1419_v1   ;;  %v1071_v0 = vphi %v1244_v0, %v1418_v0  }
  0x27   : >> { %s266_s30 = sshra.s32 %s672_s28, 7  ;;  %p1300_p4 = scmp.ge.s32.totalorder %s248_s24, 2  }
  0x28   : >> { %s673_s4 = sshll.u32 %s266_s30, 3  ;;  %v438_v49 = vld [vmem:[%s1410_s1 + $0x38] sm:$0xff] (%p1300_p4)  ;;  %v437_v50 = vld [vmem:[%s1410_s1 + $0x30] sm:$0xff] (%p1300_p4)  ;;  %v436_v51 = vld [vmem:[%s1410_s1 + $0x28] sm:$0xff] (%p1300_p4)  ;;  %vm429_vm0 = vcmask (%p1300_p4), 1040384   ;;  %vm440_vm1 = vcmask (%p1300_p4), 523264   ;;  %s527_s18 = scalar_lea.hbm (%p1300_p4), %s1412_s3, %s1059_s15 }
  0x29   : >> { %s269_s5 = scalar_lea.vmem %s1237_s29, %s673_s4 [#allocation4]  ;;  %452 = vmatpush.msra.mxu0 (%p1300_p4), %v438_v49  ;;  %v435_v53 = vld [vmem:[%s1410_s1 + $0x20] sm:$0xff] (%p1300_p4)  ;;  %v434_v55 = vld [vmem:[%s1410_s1 + $0x18] sm:$0xff] (%p1300_p4)  ;;  %v433_v56 = vld [vmem:[%s1410_s1 + $0x10] sm:$0xff] (%p1300_p4)  ;;  %vm469_vm2 = vcmask (%p1300_p4), 1043456   ;;  %vm465_vm3 = vcmask (%p1300_p4), 31744   ;;  %s529_s21 = sshll.u32 (%p1300_p4), %s205_s22, 4  ;;  %s530_s21 = int_to_ptr.vmem [resolvable:$true] %s529_s21 }
  0x2a   : >> { %v270_v16 = vld [vmem:[%s269_s5] sm:$0xff]  ;;  %v271_v17 = vld [vmem:[%s269_s5 + $0x10] sm:$0xff]  ;;  %v432_v62 = vld [vmem:[%s1410_s1 + $0x8] sm:$0xff] (%p1300_p4)  ;;  %s531_s23 = sshll.u32 (%p1300_p4), %s527_s18, 4  ;;  %vm516_vm7 = vcmask (%p1300_p4), 516096   ;;  %s519_s15 = scalar_lea.sflag (%p1300_p4), [#allocation6], %s1233_s19  ;;  %s532_s23 = int_to_ptr.hbm [resolvable:$true] %s531_s23 }
  0x2b   : >> { %v272_v18 = vld [vmem:[%s269_s5 + $0x20] sm:$0xff]  ;;  %v273_v19 = vld [vmem:[%s269_s5 + $0x30] sm:$0xff]  ;;  %v278_v24 = vadd.f32 %v1131_v15, %v270_v16   ;;  %v279_v25 = vadd.f32 %v1127_v14, %v271_v17   ;;  %v286_v32 = vmax.f32 %v1099_v7, %v270_v16   ;;  %v287_v33 = vmax.f32 %v1095_v6, %v271_v17   ;;  %453 = vmatpush.msra.mxu0 (%p1300_p4), %v437_v50  ;;  %s931_s29 = sshra.s32 (%p1300_p4), %s532_s23, 4  ;;  %s937_s4 = scalar_lea.hbm (%p1300_p4), %s1412_s3, 2  ;;  %s932_s29 = int_to_ptr.hbm [resolvable:$true] %s931_s29 }
  0x2c   : >> { %v274_v20 = vld [vmem:[%s269_s5 + $0x40] sm:$0xff]  ;;  %v275_v21 = vld [vmem:[%s269_s5 + $0x50] sm:$0xff]  ;;  %v280_v26 = vadd.f32 %v1123_v13, %v272_v18   ;;  %v281_v27 = vadd.f32 %v1119_v12, %v273_v19   ;;  %v288_v34 = vmax.f32 %v1091_v5, %v272_v18   ;;  %v289_v35 = vmax.f32 %v1087_v4, %v273_v19   ;;  %s933_s24 = scalar_lea.hbm (%p1300_p4), %s932_s29, 1  ;;  %p938_p8 = scmp.lt.s32.totalorder (%p1300_p4), %s932_s29, %s1412_s3 }
  0x2d   : >> { %v276_v22 = vld [vmem:[%s269_s5 + $0x60] sm:$0xff]  ;;  %v277_v23 = vld [vmem:[%s269_s5 + $0x70] sm:$0xff]  ;;  %v282_v28 = vadd.f32 %v1115_v11, %v274_v20   ;;  %v283_v29 = vadd.f32 %v1111_v10, %v275_v21   ;;  %v290_v36 = vmax.f32 %v1083_v3, %v274_v20   ;;  %v291_v37 = vmax.f32 %v1079_v2, %v275_v21   ;;  %321 = vadd.xlane.f32.xlu0 (%p1300_p4), %v278_v24  ;;  %p934_p5 = scmp.ne.s32.totalorder (%p1300_p4), %s932_s29, %s933_s24  ;;  %p939_p10 = scmp.lt.s32.totalorder (%p1300_p4), %s937_s4, %s933_s24 }
  0x2e   : >> { %v284_v30 = vadd.f32 %v1107_v9, %v276_v22   ;;  %v285_v31 = vadd.f32 %v1103_v8, %v277_v23   ;;  %v292_v38 = vmax.f32 %v1075_v1, %v276_v22   ;;  %v293_v39 = vmax.f32 %v1071_v0, %v277_v23   ;;  %247 = sbr.rel (!%p1300_p4) target bundleno = 38 (0x26), region = 93  ;;  %323 = vadd.xlane.f32.xlu1 (%p1300_p4), %v279_v25  ;;  %v431_v63 = vld [vmem:[%s1410_s1] sm:$0xff] (%p1300_p4) }
  0x2f   : >> { %v1420_v2 = vmov %v291_v37  ;;  %v1421_v3 = vmov %v290_v36  ;;  %v1422_v4 = vmov %v289_v35  ;;  %v1423_v5 = vmov %v288_v34  ;;  %325 = vadd.xlane.f32.xlu2 (%p1300_p4), %v280_v26  ;;  %454 = vmatpush.msra.mxu0 (%p1300_p4), %v436_v51  ;;  %p935_p6 = pnand (%p1300_p4), %p934_p5, %p1210_p9  ;;  %p940_p13 = por (%p1300_p4), %p939_p10, %p938_p8 }
  0x30   : >> { %v1418_v0 = vmov %v293_v39  ;;  %v1419_v1 = vmov %v292_v38  ;;  %v1424_v6 = vmov %v287_v33  ;;  %v1425_v7 = vmov %v286_v32  ;;  %v439_v5 = vld [vmem:[%s1411_s2] sm:$0xf] (%p1300_p4) }
  0x31   : >> { %v1426_v8 = vmov %v285_v31  ;;  %v1427_v9 = vmov %v284_v30  ;;  %v1428_v10 = vmov %v283_v29  ;;  %v1429_v11 = vmov %v282_v28  ;;  %455 = vmatpush.msra.mxu0 (%p1300_p4), %v435_v53  ;;  %675 = vmatpush.msk.msra.mxu1 (%p1300_p4), %vm469_vm2, %v439_v5  ;;  %p936_p7 = pneg (%p1300_p4), %p935_p6 }
  0x32   : >> { %v1430_v12 = vmov %v281_v27  ;;  %v1431_v13 = vmov %v280_v26  ;;  %v1432_v14 = vmov %v279_v25  ;;  %v1433_v15 = vmov %v278_v24 }
  0x33   : > { %456 = vmatpush.msra.mxu0 %v434_v55  ;;  %p941_p0 = pnand %p940_p13, %p936_p7 }
  0x35   : > { %345 = vmax.xlane.f32.xlu0 %v286_v32  ;;  %457 = vmatpush.msra.mxu0 %v433_v56 }
  0x36   : > { %347 = vmax.xlane.f32.xlu1 %v287_v33 }
  0x37   : > { %349 = vmax.xlane.f32.xlu2 %v288_v34  ;;  %458 = vmatpush.msra.mxu0 %v432_v62 }
  0x39   : > { %459 = vmatpush.msra.mxu0 %v431_v63 }
  0x3d   : > { %327 = vadd.xlane.f32.xlu0 %v281_v27 }
  0x3e   : > { %351 = vmax.xlane.f32.xlu1 %v289_v35 }
  0x3f   : > { %329 = vadd.xlane.f32.xlu2 %v282_v28 }
  0x45   : > { %353 = vmax.xlane.f32.xlu0 %v290_v36 }
  0x46   : > { %331 = vadd.xlane.f32.xlu1 %v283_v29 }
  0x47   : > { %355 = vmax.xlane.f32.xlu2 %v291_v37 }
  0x4d   : > { %333 = vadd.xlane.f32.xlu0 %v284_v30 }
  0x4e   : > { %357 = vmax.xlane.f32.xlu1 %v292_v38 }
  0x4f   : > { %335 = vadd.xlane.f32.xlu2 %v285_v31 }
  0x55   : > { %359 = vmax.xlane.f32.xlu0 %v293_v39 }
  0xa0   : > { %v322_v40 = vpop.xlane.xlu0 %321 }
  0xa1   : > { %361 = vxpose.xlu1.b32.start [1/8] (short) (narrow) %v322_v40, 8  ;;  %v324_v41 = vpop.xlane.xlu1 %323 }
  0xa2   : > { %v326_v43 = vpop.xlane.xlu2 %325 }
  0xa8   : > { %v346_v42 = vpop.xlane.xlu0 %345 }
  0xa9   : > { %362 = vxpose.xlu1.b32.cont [2/8] (short) (narrow) %v324_v41, 8  ;;  %394 = vxpose.xlu2.b32.start [1/8] (short) (narrow) %v346_v42, 8  ;;  %v348_v44 = vpop.xlane.xlu1 %347 }
  0xaa   : > { %v350_v45 = vpop.xlane.xlu2 %349 }
  0xb0   : > { %v328_v46 = vpop.xlane.xlu0 %327 }
  0xb1   : > { %363 = vxpose.xlu1.b32.cont [3/8] (short) (narrow) %v326_v43, 8  ;;  %395 = vxpose.xlu2.b32.cont [2/8] (short) (narrow) %v348_v44, 8  ;;  %v352_v47 = vpop.xlane.xlu1 %351 }
  0xb2   : > { %v330_v48 = vpop.xlane.xlu2 %329 }
  0xb8   : > { %v354_v52 = vpop.xlane.xlu0 %353 }
  0xb9   : > { %396 = vxpose.xlu2.b32.cont [3/8] (short) (narrow) %v350_v45, 8  ;;  %364 = vxpose.xlu1.b32.cont [4/8] (short) (narrow) %v328_v46, 8  ;;  %v332_v54 = vpop.xlane.xlu1 %331 }
  0xba   : > { %v356_v57 = vpop.xlane.xlu2 %355 }
  0xc0   : > { %v334_v58 = vpop.xlane.xlu0 %333 }
  0xc1   : > { %397 = vxpose.xlu2.b32.cont [4/8] (short) (narrow) %v352_v47, 8  ;;  %365 = vxpose.xlu1.b32.cont [5/8] (short) (narrow) %v330_v48, 8  ;;  %v358_v60 = vpop.xlane.xlu1 %357 }
  0xc2   : > { %v336_v59 = vpop.xlane.xlu2 %335 }
  0xc8   : > { %v360_v61 = vpop.xlane.xlu0 %359 }
  0xc9   : > { %366 = vxpose.xlu1.b32.cont [6/8] (short) (narrow) %v332_v54, 8  ;;  %398 = vxpose.xlu2.b32.cont [5/8] (short) (narrow) %v354_v52, 8 }
  0xd1   : > { %399 = vxpose.xlu2.b32.cont [6/8] (short) (narrow) %v356_v57, 8  ;;  %367 = vxpose.xlu1.b32.cont [7/8] (short) (narrow) %v334_v58, 8 }
  0xd9   : > { %368 = vxpose.xlu1.b32.end [8/8] (short) (narrow) %v336_v59, 8  ;;  %400 = vxpose.xlu2.b32.cont [7/8] (short) (narrow) %v358_v60, 8 }
  0xe1   : > { %401 = vxpose.xlu2.b32.end [8/8] (short) (narrow) %v360_v61, 8 }
 0x142   : > { %v410_v0 = vpop.trf.xlu2 }
 0x143   : > { %v427_v1 = vrot.slane %v410_v0, 7 }
 0x145   : > { %v377_v2 = vpop.trf.xlu1 }
 0x146   : > { %v393_v3 = vmul.f32 0.00390625, %v377_v2 }
 0x148   : > { %v430_v4 = vsel %vm429_vm0, %v393_v3, %v427_v1 }
 0x149   : > { %674 = vmatmul.msk.f32.vlgmr.msra.gmra.mxu0 %vm440_vm1, %v430_v4 }
 0x1c6   : > { %v461_v6 = vpop.f32.mrf.mxu0 }
 0x1c7   : > { %v464_v7 = vmax.f32 %v461_v6, 0.0 }
 0x1c9   : > { %676 = vmatmul.msk.f32.vlgmr.msra.gmra.mxu1 %vm465_vm3, %v464_v7 }
 0x246   : > { %v490_v8 = vpop.f32.mrf.mxu1 }
 0x247   : > { %v494_v9 = vrot.slane %v490_v8, 1 }
 0x249   : > { %v496_v10 = vadd.f32 %v494_v9, %v490_v8 }
 0x24b   : > { %v677_v11 = vmul.f32 -1.442695, %v496_v10 }
 0x24d   : > { %883 = vpow2.f32 %v677_v11 }
 0x253   : > { %v884_v12 = vpop.eup %883 }
 0x254   : > { %v500_v13 = vadd.f32 1.0, %v884_v12 }
 0x256   : > { %885 = vrcp.f32 %v500_v13  ;;  %v512_v17 = vand.u32 2147483648, %v500_v13  ;;  %v510_v19 = vand.u32 2147483647, %v500_v13  ;;  %vm506_vm5 = vweird.f32 %v500_v13 }
 0x258   : > { %v513_v21 = vor.u32 1.1754944e-38, %v512_v17  ;;  %vm511_vm8 = vcmp.eq.f32.partialorder %v510_v19, 8.507059e+37 }
 0x25c   : > { %v886_v14 = vpop.eup %885 }
 0x25d   : > { %v502_v15 = vmul.f32 %v886_v14, %v500_v13  ;;  %vm507_vm4 = vweird.f32 %v886_v14 }
 0x25e   : > { %vm508_vm6 = vmor %vm506_vm5, %vm507_vm4 }
 0x25f   : > { %v503_v16 = vsub.f32 1.0, %v502_v15 }
 0x261   : > { %v504_v18 = vmul.f32 %v886_v14, %v503_v16 }
 0x263   : > { %v505_v20 = vadd.f32 %v886_v14, %v504_v18 }
 0x265   : > { %v509_v22 = vsel %vm508_vm6, %v886_v14, %v505_v20 }
 0x266   : > { %v514_v23 = vsel %vm511_vm8, %v513_v21, %v509_v22 }
 0x267   : > { %517 = vst.msk [vmem:[%s205_s22] sm:$0x1] %vm516_vm7, %v514_v23 }
 0x268   : > { %944 = shalt.err (!%p941_p0)
}
 0x269   : > { %683 = dma.vmem_to_hbm [thread:$0]  (%p1210_p9), %s530_s21, 16, %s532_s23, %s519_s15  }
 0x26a PF: > { %s543_s19 = sand.u32 1, %s1047_s12   ;;  %p690_p1 = pnand %p666_p12, %p1217_p11 }
 0x26b   : > { %s544_s22 = scalar_lea.sflag [#allocation6], %s543_s19 }
 0x26c   : > { %p691_p2 = pneg %p690_p1 }
 0x26e   : > { %1042 = dma.done.wait (%p691_p2), %s544_s22, 16  }
 0x26f   : > { %1044 = vsyncadd (%p691_p2), %s544_s22, 4294967280  ;;  %s19_s17 = sadd.s32 1, %s1067_s17   ;;  %s1434_s12 = smov %s1051_s13 }
 0x270   : > { %p16_p3 = scmp.ge.s32.totalorder %s19_s17, 4   ;;  %s1435_s13 = smov %s1055_s14 }
 0x271   : > { %s1436_s14 = smov %s1215_s26  ;;  %s1437_s15 = smov %s1063_s16 }
 0x272   : > { %s1438_s16 = smov %s1440_s20  ;;  %18 = sbr.rel (!%p16_p3) target bundleno = 6 (0x6), region = 104 }
 0x277   :  { %549 = vsyncpa [#allocation5], 1 }
 0x278   :  { %551 = vsyncpa [#allocation5 + $0x1], 1 }
 0x279   :  { %552 = vsyncpa [#allocation6], 1 }
 0x27a   :  { %554 = vsyncpa [#allocation6 + $0x1], 1 }

</bundles_post_ra>
